<compile_context>
chip_gen: v7x
topology: tpu7x:2x2x1
jax: 0.10.0
libtpu: 0.0.40
codegen_flags: <defaults>
</compile_context>

<pallas_src>
from functools import partial

import jax
import jax.numpy as jnp
from jax.experimental import pallas as pl
from jax.experimental.pallas import tpu as pltpu


def _round_up(x: int, m: int) -> int:
    return (x + m - 1) // m * m


def _film_kernel(layer_rows, x_ref, params_ref, out_ref):
    """MLP layer chain on one batch tile.

    layer_rows: static tuple of (row_offset, num_weight_rows) per layer into
    the packed parameter buffer.  Bias for a layer lives in the single row
    right after its weight block (row_offset + num_weight_rows).
    """
    num_layers = len(layer_rows)
    h = x_ref[...]                                        # (tm, in0_pad) f32
    for i, (off, rows) in enumerate(layer_rows):
        w = params_ref[off:off + rows, :]                 # (rows, d_pad), static/aligned
        b = params_ref[off + rows:off + rows + 1, :]      # (1, d_pad)
        h = jnp.dot(h, w, preferred_element_type=jnp.float32) + b
        if i < num_layers - 1:                            # ReLU on all but last layer
            h = jnp.maximum(h, 0.0)
    # Single store of the full film_output width (gamma's +1 already folded
    # into the last bias at pack time).
    out_ref[...] = h[:, :out_ref.shape[1]]


def _pack_params(weights, biases, num_params_to_film, in0_pad, d_pad):
    """Pack all layers into one (total_rows, d_pad) f32 buffer.

    Per layer i: [ W_i zero-padded to (rows_i, d_pad) ; bias in row 0 of an
    8-row zero block ].  rows_0 = in0_pad, rows_{i>0} = d_pad (activations are
    carried at d_pad lanes).  The final bias gets +1 folded into its gamma half.
    """
    num_layers = len(weights)
    blocks, layer_rows, off = [], [], 0
    for i, (w, b) in enumerate(zip(weights, biases)):
        in_dim, out_dim = w.shape
        rows = in0_pad if i == 0 else d_pad
        w_pad = jnp.zeros((rows, d_pad), jnp.float32).at[:in_dim, :out_dim].set(
            w.astype(jnp.float32))
        b = b.astype(jnp.float32)
        if i == num_layers - 1:
            b = b.at[num_params_to_film:].add(1.0)   # fold gamma = delta_gamma + 1
        b_pad = jnp.zeros((8, d_pad), jnp.float32).at[0, :out_dim].set(b)
        blocks += [w_pad, b_pad]
        layer_rows.append((off, rows))
        off += rows + 8
    return jnp.concatenate(blocks, axis=0), tuple(layer_rows)


def film_generator_forward(x, weights, biases, num_params_to_film, *, batch_tile=256):
    """Pallas-backed FiLMGenerator.forward.

    x:        (batch, film_input_dim) float32
    weights:  list of (in_dim, out_dim) float32  (transposed vs. nn.Linear)
    biases:   list of (out_dim,) float32
    returns:  (beta, gamma), each (batch, num_params_to_film)
    """
    assert x.ndim == 2
    batch, film_input_dim = x.shape
    film_output_dim = 2 * num_params_to_film
    assert weights[0].shape[0] == film_input_dim
    assert weights[-1].shape[1] == film_output_dim

    in0_pad = _round_up(film_input_dim, 8)
    d_pad = _round_up(max(w.shape[1] for w in weights), 128)

    # Batch tile: multiple of 8 sublanes; sized well under v7x's 32 MiB scoped
    # VMEM default even with double buffering of x / output tiles.
    tm = min(_round_up(batch, 8), _round_up(batch_tile, 8))
    padded_batch = _round_up(batch, tm)
    grid = (padded_batch // tm,)

    x_p = jnp.pad(x.astype(jnp.float32),
                  ((0, padded_batch - batch), (0, in0_pad - film_input_dim)))
    packed, layer_rows = _pack_params(weights, biases, num_params_to_film,
                                      in0_pad, d_pad)

    flops = 2 * batch * sum(w.shape[0] * w.shape[1] for w in weights)
    bytes_accessed = 4 * (x_p.size + packed.size + padded_batch * film_output_dim)
    cost = pl.CostEstimate(flops=flops, transcendentals=0,
                           bytes_accessed=bytes_accessed)

    # TODO(synk): optionally cast x / packed weights to bf16 (f32 accumulate)
    # for ~3x MXU throughput on v6e/v7x once the model tolerates it.
    kernel = partial(_film_kernel, layer_rows)
    film_output = pl.pallas_call(
        kernel,
        out_shape=jax.ShapeDtypeStruct((padded_batch, film_output_dim), jnp.float32),
        grid=grid,
        in_specs=[
            pl.BlockSpec((tm, in0_pad), lambda i: (i, 0)),     # streamed x tiles
            pl.BlockSpec(packed.shape, lambda i: (0, 0)),      # params: resident
        ],
        out_specs=pl.BlockSpec((tm, film_output_dim), lambda i: (i, 0)),
        compiler_params=pltpu.CompilerParams(dimension_semantics=("parallel",)),
        cost_estimate=cost,
    )(x_p, packed)

    beta = film_output[:batch, :num_params_to_film]
    gamma = film_output[:batch, num_params_to_film:]
    return beta, gamma


def _reference_forward(x, weights, biases, num_params_to_film):
    h = x
    for i, (w, b) in enumerate(zip(weights, biases)):
        h = h @ w + b
        if i < len(weights) - 1:
            h = jnp.maximum(h, 0.0)
    beta = h[:, :num_params_to_film]
    gamma = h[:, num_params_to_film:] + 1.0
    return beta, gamma


if __name__ == "__main__":
    # Module configuration (small, consistent with FiLMGenerator.__init__)
    batch = 2
    film_input_dim = 8
    num_params_to_film = 16
    hidden_layers = (32, 32)
    film_output_dim = 2 * num_params_to_film  # num_beta_gamma = 2

    layer_sizes = [film_input_dim] + list(hidden_layers) + [film_output_dim]

    # Deterministic parameter / input construction.
    key = jax.random.PRNGKey(0)
    key, xk = jax.random.split(key)
    x = jax.random.normal(xk, (batch, film_input_dim), dtype=jnp.float32)

    weights, biases = [], []
    for i in range(len(layer_sizes) - 1):
        key, wk, bk = jax.random.split(key, 3)
        fan_in = layer_sizes[i]
        scale = 1.0 / jnp.sqrt(jnp.float32(fan_in))
        weights.append(
            scale * jax.random.normal(wk, (layer_sizes[i], layer_sizes[i + 1]),
                                      dtype=jnp.float32))
        biases.append(
            scale * jax.random.normal(bk, (layer_sizes[i + 1],),
                                      dtype=jnp.float32))

    beta, gamma = film_generator_forward(x, weights, biases, num_params_to_film)
    beta = jax.block_until_ready(beta)
    gamma = jax.block_until_ready(gamma)

    # Sanity checks against a pure-JAX reference.
    beta_ref, gamma_ref = _reference_forward(x, weights, biases, num_params_to_film)
    assert beta.shape == gamma.shape == (batch, num_params_to_film)
    assert jnp.allclose(beta, beta_ref, atol=1e-5, rtol=1e-5)
    assert jnp.allclose(gamma, gamma_ref, atol=1e-5, rtol=1e-5)

    print("KERNEL_OK")
</pallas_src>

<mosaic_0001>
module attributes {stable_mosaic.version = 11 : i64} {
  func.func @_film_kernel(%arg0: i32, %arg1: memref<8x8xf32, #tpu.memory_space<vmem>>, %arg2: memref<288x128xf32, #tpu.memory_space<vmem>>, %arg3: memref<8x32xf32, #tpu.memory_space<vmem>>) attributes {dimension_semantics = [#tpu.dimension_semantics<parallel>], iteration_bounds = array<i64: 1>, scalar_prefetch = 0 : i64, scratch_operands = 0 : i64, tpu.core_type = #tpu.core_type<tc>, window_params = [{transform_indices = @transform_0, window_bounds = array<i64: 8, 8>}, {pipeline_mode = #tpu.pipeline_mode<synchronous>, transform_indices = @transform_1, window_bounds = array<i64: 288, 128>}, {transform_indices = @transform_2, window_bounds = array<i64: 8, 32>}]} {
    %c0 = arith.constant 0 : index
    %c0_0 = arith.constant 0 : index
    %0 = vector.load %arg1[%c0, %c0_0] : memref<8x8xf32, #tpu.memory_space<vmem>>, vector<8x8xf32>
    %c0_1 = arith.constant 0 : index
    %c0_2 = arith.constant 0 : index
    %1 = vector.load %arg2[%c0_1, %c0_2] : memref<288x128xf32, #tpu.memory_space<vmem>>, vector<8x128xf32>
    %c8 = arith.constant 8 : index
    %c0_3 = arith.constant 0 : index
    %2 = vector.load %arg2[%c8, %c0_3] : memref<288x128xf32, #tpu.memory_space<vmem>>, vector<1x128xf32>
    %cst = arith.constant dense<0.000000e+00> : vector<8x128xf32>
    %3 = tpu.matmul %0, %1, %cst {dimension_numbers = #tpu.dot_dimension_numbers<[1], [0], [0], [1], [0, 0, 1, 1], [], []>} : vector<8x8xf32>, vector<8x128xf32>, vector<8x128xf32> -> vector<8x128xf32>
    %4 = vector.broadcast %2 : vector<1x128xf32> to vector<8x128xf32>
    %5 = arith.addf %3, %4 : vector<8x128xf32>
    %cst_4 = arith.constant 0.000000e+00 : f32
    %6 = vector.broadcast %cst_4 : f32 to vector<8x128xf32>
    %7 = arith.maximumf %5, %6 : vector<8x128xf32>
    %c16 = arith.constant 16 : index
    %c0_5 = arith.constant 0 : index
    %8 = vector.load %arg2[%c16, %c0_5] : memref<288x128xf32, #tpu.memory_space<vmem>>, vector<128x128xf32>
    %c144 = arith.constant 144 : index
    %c0_6 = arith.constant 0 : index
    %9 = vector.load %arg2[%c144, %c0_6] : memref<288x128xf32, #tpu.memory_space<vmem>>, vector<1x128xf32>
    %cst_7 = arith.constant dense<0.000000e+00> : vector<8x128xf32>
    %10 = tpu.matmul %7, %8, %cst_7 {dimension_numbers = #tpu.dot_dimension_numbers<[1], [0], [0], [1], [0, 0, 1, 1], [], []>} : vector<8x128xf32>, vector<128x128xf32>, vector<8x128xf32> -> vector<8x128xf32>
    %11 = vector.broadcast %9 : vector<1x128xf32> to vector<8x128xf32>
    %12 = arith.addf %10, %11 : vector<8x128xf32>
    %cst_8 = arith.constant 0.000000e+00 : f32
    %13 = vector.broadcast %cst_8 : f32 to vector<8x128xf32>
    %14 = arith.maximumf %12, %13 : vector<8x128xf32>
    %c152 = arith.constant 152 : index
    %c0_9 = arith.constant 0 : index
    %15 = vector.load %arg2[%c152, %c0_9] : memref<288x128xf32, #tpu.memory_space<vmem>>, vector<128x128xf32>
    %c280 = arith.constant 280 : index
    %c0_10 = arith.constant 0 : index
    %16 = vector.load %arg2[%c280, %c0_10] : memref<288x128xf32, #tpu.memory_space<vmem>>, vector<1x128xf32>
    %cst_11 = arith.constant dense<0.000000e+00> : vector<8x128xf32>
    %17 = tpu.matmul %14, %15, %cst_11 {dimension_numbers = #tpu.dot_dimension_numbers<[1], [0], [0], [1], [0, 0, 1, 1], [], []>} : vector<8x128xf32>, vector<128x128xf32>, vector<8x128xf32> -> vector<8x128xf32>
    %18 = vector.broadcast %16 : vector<1x128xf32> to vector<8x128xf32>
    %19 = arith.addf %17, %18 : vector<8x128xf32>
    %20 = vector.extract_strided_slice %19 {offsets = [0, 0], sizes = [8, 32], strides = [1, 1]} : vector<8x128xf32> to vector<8x32xf32>
    %c0_12 = arith.constant 0 : index
    %c0_13 = arith.constant 0 : index
    %21 = vector.load %arg3[%c0_12, %c0_13] : memref<8x32xf32, #tpu.memory_space<vmem>>, vector<8x32xf32>
    tpu.vector_store %arg3[%c0_12, %c0_13], %20 {strides = array<i32>} : memref<8x32xf32, #tpu.memory_space<vmem>>, vector<8x32xf32>,
    return
  }
  func.func @transform_0(%arg0: i32) -> (i32, i32) {
    %c0_i32 = arith.constant 0 : i32
    %c0_i32_0 = arith.constant 0 : i32
    return %arg0, %c0_i32 : i32, i32
  }
  func.func @transform_1(%arg0: i32) -> (i32, i32) {
    %c0_i32 = arith.constant 0 : i32
    %c0_i32_0 = arith.constant 0 : i32
    %c0_i32_1 = arith.constant 0 : i32
    return %c0_i32, %c0_i32_0 : i32, i32
  }
  func.func @transform_2(%arg0: i32) -> (i32, i32) {
    %c0_i32 = arith.constant 0 : i32
    %c0_i32_0 = arith.constant 0 : i32
    return %arg0, %c0_i32 : i32, i32
  }
}

</mosaic_0001>

<bundles_post_ra>
// kernel: tpu_custom_call.1
= control target key start
LH: loop header
LB: loop body
LE: loop exit
PB: predicated region body
PF: predicated region fallthrough
CT: control target
= control target key end

     0   :  { %7 = vsyncpa [#allocation3], 0  ;;  %s649_s0 = inlined_call_operand.hbm [shape: f32[8,8], index: 0, kind: input, shape index: {}]   ;;  %s650_s1 = inlined_call_operand.hbm [shape: f32[288,128], index: 1, kind: input, shape index: {}]   ;;  %s651_s2 = inlined_call_operand.hbm [shape: f32[8,32], index: 2, kind: output, shape index: {}]  }
   0x1   :  { %8 = vsyncpa [#allocation6], 0 }
   0x2   :  { %9 = vsyncpa [#allocation4], 0  ;;  %s564_s9 = smov [#allocation2]   ;;  %s565_s11 = smov [#allocation5]  }
   0x3   :  { %s16_s10 = sshll.u32 %s564_s9, 4  ;;  %s25_s12 = sshll.u32 %s565_s11, 4  ;;  %s17_s10 = int_to_ptr.vmem [resolvable:$true] %s16_s10  ;;  %s587_s12 = int_to_ptr.vmem [resolvable:$true] %s25_s12 }
   0x4   :  { %s492_s15 = scalar_lea.hbm %s649_s0, 128 }
   0x5   :  { %p493_p0 = scmp.ne.s32.totalorder %s649_s0, %s492_s15  ;;  %p496_p1 = scmp.lt.u32.totalorder %s492_s15, %s649_s0 }
   0x7   :  { %p498_p2 = pnand %p496_p1, %p493_p0 }
   0x9   :  { %501 = shalt.err (!%p498_p2)
}
   0xa   :  { %s502_s20 = scalar_lea.vmem %s17_s10, 128  ;;  %p507_p4 = scmp.lt.s32.totalorder %s17_s10, %s17_s10 }
   0xb   :  { %p503_p3 = scmp.ne.s32.totalorder %s17_s10, %s502_s20  ;;  %p508_p5 = scmp.lt.s32.totalorder %s502_s20, %s502_s20 }
   0xd   :  { %p509_p6 = por %p508_p5, %p507_p4 }
   0xf   :  { %p510_p7 = pnand %p509_p6, %p503_p3 }
  0x11   :  { %513 = shalt.err (!%p510_p7)
}
  0x12   :  { %19 = dma.hbm_to_vmem [thread:$0]  %s649_s0, 128, %s17_s10, [#allocation3]  }
  0x13   :  { %s514_s25 = scalar_lea.hbm %s650_s1, 4608 }
  0x14   :  { %p515_p8 = scmp.ne.s32.totalorder %s650_s1, %s514_s25  ;;  %p518_p9 = scmp.lt.u32.totalorder %s514_s25, %s650_s1 }
  0x16   :  { %p520_p10 = pnand %p518_p9, %p515_p8 }
  0x18   :  { %523 = shalt.err (!%p520_p10)
}
  0x19   :  { %s524_s30 = scalar_lea.vmem %s587_s12, 4608  ;;  %p529_p12 = scmp.lt.s32.totalorder %s587_s12, %s587_s12 }
  0x1a   :  { %p525_p11 = scmp.ne.s32.totalorder %s587_s12, %s524_s30  ;;  %p530_p13 = scmp.lt.s32.totalorder %s524_s30, %s524_s30 }
  0x1c   :  { %p531_p0 = por %p530_p13, %p529_p12 }
  0x1e   :  { %p532_p1 = pnand %p531_p0, %p525_p11 }
  0x20   :  { %535 = shalt.err (!%p532_p1)
}
  0x21   :  { %s566_s0 = smov 128   ;;  %s567_s3 = smov 8  }
  0x22   :  { %31 = dma.hbm_to_vmem [thread:$0]  %s650_s1, 4608, %s587_s12, [#allocation6], %s566_s0, %s566_s0, %s567_s3  }
  0x23   :  { %558 = dma.done.wait [#allocation3], 128  }
  0x24   :  { %559 = vsyncadd [#allocation3], 4294967168 }
  0x25   :  { %560 = dma.done.wait [#allocation6], 4608  }
  0x26   :  { %561 = vsyncadd [#allocation6], 4294962688  ;;  %v568_v0 = vmov 0.0   ;;  %vm569_vm0 = vmmov 0   ;;  %v570_v1 = vmov 0.0|0.0   ;;  %vm45_vm1 = vcmask 64512  }
  0x27   :  { %361 = vmatprep.subr.mxu0 %v568_v0  ;;  %363 = vmatprep.mubr.msk.f32.mxu0 %vm569_vm0, %v568_v0  ;;  %v39_v2 = vld [vmem:[#allocation5] sm:$0xff]  ;;  %v38_v3 = vld [vmem:[#allocation2] sm:$0xff]  ;;  %v120_v4 = vld [vmem:[#allocation5 + $0x10] sm:$0xff]  ;;  %s571_s1 = smov [#allocation7]   ;;  %vm303_vm2 = vcmask 261120  }
  0x28   :  { %436 = vmatprep.subr.bf16.mxu1 %v570_v1  ;;  %398 = vmatprep.mubr.msk.f32.mxu1 %vm569_vm0, %v568_v0  ;;  %v121_v5 = vld [vmem:[#allocation5 + $0x18] sm:$0xff]  ;;  %v122_v6 = vld [vmem:[#allocation5 + $0x20] sm:$0xff]  ;;  %v123_v7 = vld [vmem:[#allocation5 + $0x28] sm:$0xff]  ;;  %s311_s6 = sshll.u32 %s571_s1, 4  ;;  %s312_s6 = int_to_ptr.vmem [resolvable:$true] %s311_s6 }
  0x29   :  { %362 = vmatpush3.msra.mxu0 %v39_v2  ;;  %v437_v8 = vpack.c.bf16 %v121_v5, %v120_v4  ;;  %v440_v9 = vpack.c.bf16 %v123_v7, %v122_v6  ;;  %v124_v10 = vld [vmem:[#allocation5 + $0x30] sm:$0xff]  ;;  %v125_v11 = vld [vmem:[#allocation5 + $0x38] sm:$0xff]  ;;  %v126_v13 = vld [vmem:[#allocation5 + $0x40] sm:$0xff]  ;;  %s536_s7 = scalar_lea.vmem %s312_s6, 128  ;;  %p541_p3 = scmp.lt.s32.totalorder %s312_s6, %s312_s6 }
  0x2a   :  { %364 = vmatmul.mubr.msk.f32.vlgmr.msra.gmra.mrb[0].mxu0 %vm45_vm1, %v38_v3  ;;  %460 = vmatprep.subr.bf16.mxu0 %v570_v1  ;;  %v443_v12 = vpack.c.bf16 %v125_v11, %v124_v10  ;;  %v127_v14 = vld [vmem:[#allocation5 + $0x48] sm:$0xff]  ;;  %v128_v16 = vld [vmem:[#allocation5 + $0x50] sm:$0xff]  ;;  %v129_v17 = vld [vmem:[#allocation5 + $0x58] sm:$0xff]  ;;  %p537_p2 = scmp.ne.s32.totalorder %s312_s6, %s536_s7  ;;  %p542_p4 = scmp.lt.s32.totalorder %s536_s7, %s536_s7 }
  0x2b   :  { %433 = vmatprep.mubr.msk.f32.mxu0 %vm569_vm0, %v568_v0  ;;  %438 = vmatpush3.bf16.msra.mxu1 %v437_v8  ;;  %v446_v15 = vpack.c.bf16 %v127_v14, %v126_v13  ;;  %v449_v18 = vpack.c.bf16 %v129_v17, %v128_v16  ;;  %v130_v19 = vld [vmem:[#allocation5 + $0x60] sm:$0xff]  ;;  %v131_v20 = vld [vmem:[#allocation5 + $0x68] sm:$0xff]  ;;  %v132_v22 = vld [vmem:[#allocation5 + $0x70] sm:$0xff] }
  0x2c   :  { %439 = vmatprep.subr.bf16.mxu1 %v570_v1  ;;  %v452_v21 = vpack.c.bf16 %v131_v20, %v130_v19  ;;  %v133_v23 = vld [vmem:[#allocation5 + $0x78] sm:$0xff]  ;;  %v134_v25 = vld [vmem:[#allocation5 + $0x80] sm:$0xff]  ;;  %v135_v26 = vld [vmem:[#allocation5 + $0x88] sm:$0xff]  ;;  %p543_p5 = por %p542_p4, %p541_p3 }
  0x2d   :  { %v455_v24 = vpack.c.bf16 %v133_v23, %v132_v22  ;;  %v458_v27 = vpack.c.bf16 %v135_v26, %v134_v25  ;;  %v212_v28 = vld [vmem:[#allocation5 + $0x98] sm:$0xff]  ;;  %v213_v29 = vld [vmem:[#allocation5 + $0xa0] sm:$0xff]  ;;  %v214_v30 = vld [vmem:[#allocation5 + $0xa8] sm:$0xff] }
  0x2e   :  { %v461_v31 = vpack.c.bf16 %v213_v29, %v212_v28  ;;  %v215_v32 = vld [vmem:[#allocation5 + $0xb0] sm:$0xff]  ;;  %v216_v34 = vld [vmem:[#allocation5 + $0xb8] sm:$0xff]  ;;  %v217_v35 = vld [vmem:[#allocation5 + $0xc0] sm:$0xff]  ;;  %p544_p6 = pnand %p543_p5, %p537_p2 }
  0x2f   :  { %441 = vmatpush3.bf16.msra.mxu1 %v440_v9  ;;  %v464_v33 = vpack.c.bf16 %v215_v32, %v214_v30  ;;  %v467_v36 = vpack.c.bf16 %v217_v35, %v216_v34  ;;  %v218_v37 = vld [vmem:[#allocation5 + $0xc8] sm:$0xff]  ;;  %v219_v38 = vld [vmem:[#allocation5 + $0xd0] sm:$0xff]  ;;  %v220_v40 = vld [vmem:[#allocation5 + $0xd8] sm:$0xff] }
  0x30   :  { %442 = vmatprep.subr.bf16.mxu1 %v570_v1  ;;  %462 = vmatpush3.bf16.msra.mxu0 %v461_v31  ;;  %v470_v39 = vpack.c.bf16 %v219_v38, %v218_v37  ;;  %v221_v41 = vld [vmem:[#allocation5 + $0xe0] sm:$0xff]  ;;  %v222_v43 = vld [vmem:[#allocation5 + $0xe8] sm:$0xff]  ;;  %v223_v44 = vld [vmem:[#allocation5 + $0xf0] sm:$0xff] }
  0x31   :  { %463 = vmatprep.subr.bf16.mxu0 %v570_v1  ;;  %v473_v42 = vpack.c.bf16 %v221_v41, %v220_v40  ;;  %v476_v45 = vpack.c.bf16 %v223_v44, %v222_v43  ;;  %v224_v46 = vld [vmem:[#allocation5 + $0xf8] sm:$0xff]  ;;  %v225_v47 = vld [vmem:[#allocation5 + $0x100] sm:$0xff]  ;;  %v321_v49 = vld [vmem:[#allocation5 + $0x8] ss:$0 sm:$0xff] }
  0x32   :  { %v479_v48 = vpack.c.bf16 %v225_v47, %v224_v46  ;;  %v226_v54 = vld [vmem:[#allocation5 + $0x108] sm:$0xff]  ;;  %v227_v55 = vld [vmem:[#allocation5 + $0x110] sm:$0xff]  ;;  %v324_v62 = vld [vmem:[#allocation5 + $0x118] ss:$0 sm:$0xff] }
  0x33   :  { %444 = vmatpush3.bf16.msra.mxu1 %v443_v12  ;;  %v482_v56 = vpack.c.bf16 %v227_v55, %v226_v54  ;;  %v323_v57 = vld [vmem:[#allocation5 + $0x90] ss:$0 sm:$0xff] }
  0x34   :  { %445 = vmatprep.subr.bf16.mxu1 %v570_v1  ;;  %465 = vmatpush3.bf16.msra.mxu0 %v464_v33 }
  0x35   :  { %466 = vmatprep.subr.bf16.mxu0 %v570_v1 }
  0x37   :  { %447 = vmatpush3.bf16.msra.mxu1 %v446_v15 }
  0x38   :  { %448 = vmatprep.subr.bf16.mxu1 %v570_v1  ;;  %468 = vmatpush3.bf16.msra.mxu0 %v467_v36 }
  0x39   :  { %469 = vmatprep.subr.bf16.mxu0 %v570_v1 }
  0x3b   :  { %450 = vmatpush3.bf16.msra.mxu1 %v449_v18 }
  0x3c   :  { %451 = vmatprep.subr.bf16.mxu1 %v570_v1  ;;  %471 = vmatpush3.bf16.msra.mxu0 %v470_v39 }
  0x3d   :  { %472 = vmatprep.subr.bf16.mxu0 %v570_v1 }
  0x3f   :  { %453 = vmatpush3.bf16.msra.mxu1 %v452_v21 }
  0x40   :  { %454 = vmatprep.subr.bf16.mxu1 %v570_v1  ;;  %474 = vmatpush3.bf16.msra.mxu0 %v473_v42 }
  0x41   :  { %475 = vmatprep.subr.bf16.mxu0 %v570_v1 }
  0x43   :  { %456 = vmatpush3.bf16.msra.mxu1 %v455_v24 }
  0x44   :  { %457 = vmatprep.subr.bf16.mxu1 %v570_v1  ;;  %477 = vmatpush3.bf16.msra.mxu0 %v476_v45 }
  0x45   :  { %478 = vmatprep.subr.bf16.mxu0 %v570_v1 }
  0x47   :  { %459 = vmatpush3.bf16.msra.mxu1 %v458_v27 }
  0x48   :  { %480 = vmatpush3.bf16.msra.mxu0 %v479_v48 }
  0x49   :  { %481 = vmatprep.subr.bf16.mxu0 %v570_v1 }
  0x4c   :  { %483 = vmatpush3.bf16.msra.mxu0 %v482_v56 }
  0xfd   :  { %v115_v50 = vpop.f32.mrb[0].mxu0 }
  0xfe   :  { %v116_v51 = vadd.f32 %v321_v49, %v115_v50  ;;  %v365_v52 = vpop.f32.mrb[1].mxu0 }
 0x100   :  { %v119_v53 = vmax.f32 %v116_v51, 0.0 }
 0x102   :  { %399 = vmatmul.mubr.f32.vlgmr.msra.gmra.mrb[0].mxu1 %v119_v53 }
 0x1d5   :  { %v207_v58 = vpop.f32.mrb[0].mxu1 }
 0x1d6   :  { %v208_v59 = vadd.f32 %v323_v57, %v207_v58  ;;  %v400_v60 = vpop.f32.mrb[1].mxu1 }
 0x1d8   :  { %v211_v61 = vmax.f32 %v208_v59, 0.0 }
 0x1da   :  { %434 = vmatmul.mubr.f32.vlgmr.msra.gmra.mrb[2].mxu0 %v211_v61 }
 0x2ad   :  { %v299_v63 = vpop.f32.mrb[2].mxu0 }
 0x2ae   :  { %v300_v0 = vadd.f32 %v324_v62, %v299_v63  ;;  %v435_v1 = vpop.f32.mrb[3].mxu0 }
 0x2b0   :  { %304 = vst.msk [vmem:[#allocation7] sm:$0xff] %vm303_vm2, %v300_v0 }
 0x2b1   :  { %547 = shalt.err (!%p544_p6)
}
 0x2b2   :  { %s548_s10 = scalar_lea.hbm %s651_s2, 128 }
 0x2b3   :  { %p549_p7 = scmp.ne.s32.totalorder %s651_s2, %s548_s10  ;;  %p552_p8 = scmp.lt.u32.totalorder %s548_s10, %s651_s2 }
 0x2b5   :  { %p554_p9 = pnand %p552_p8, %p549_p7 }
 0x2b7   :  { %557 = shalt.err (!%p554_p9)
}
 0x2b8   :  { %314 = dma.vmem_to_hbm [thread:$0]  %s312_s6, 128, %s651_s2, [#allocation4]  }
 0x2b9   :  { %562 = dma.done.wait [#allocation4], 128  }
 0x2ba   :  { %563 = vsyncadd [#allocation4], 4294967168 }
 0x2bb   :  { %318 = vsyncpa [#allocation3], 1 }
 0x2bc   :  { %319 = vsyncpa [#allocation6], 1 }
 0x2bd   :  { %320 = vsyncpa [#allocation4], 1 }

</bundles_post_ra>
